<compile_context>
chip_gen: v5e
topology: v5e:2x2
jax: 0.10.0
libtpu: 0.0.40
codegen_flags: <defaults>
</compile_context>

<pallas_src>
import math

import jax
import jax.numpy as jnp
from jax.experimental import pallas as pl
from jax.experimental.pallas import tpu as pltpu


def _layer0_kernel(x_ref, wbd_ref, att_ref, b_ref, o_ref):
    # x_ref:  (N, B*Fin)   batch packed along lanes
    # wbd_ref:(B*Fin, B*Fout) block-diagonal weight (W repeated on the diagonal)
    # att_ref:(N, N), b_ref:(1, B*Fout), o_ref:(N, B*Fout)
    t = jnp.dot(att_ref[...], x_ref[...], preferred_element_type=jnp.float32)
    out = jnp.dot(t, wbd_ref[...], preferred_element_type=jnp.float32)
    o_ref[...] = (out + b_ref[...]).astype(o_ref.dtype)          # one bias add, one store


def _make_deep_kernel(alpha, beta):
    def kernel(x_ref, y0_ref, wbd_ref, att_ref, b_ref, o_ref):
        # support = (1-alpha) * att @ x + alpha * y0, built as a VALUE (no scratch).
        support = (1.0 - alpha) * jnp.dot(
            att_ref[...], x_ref[...], preferred_element_type=jnp.float32
        ) + alpha * y0_ref[...].astype(jnp.float32)
        # Identity-mix rewrite: support @ (beta*W_bd + (1-beta)*I)
        out = beta * jnp.dot(
            support, wbd_ref[...], preferred_element_type=jnp.float32
        ) + (1.0 - beta) * support
        o_ref[...] = (out + b_ref[...]).astype(o_ref.dtype)

    return kernel


def graph_convolution(x, weight, att, bias, y0=None, layer_nums=0):
    """Pallas implementation of GraphConvolution.forward (is_ga=False, bias=True)."""
    B, node_n, in_f = x.shape
    out_f = weight.shape[1]

    # Lane-dense layout: (B, N, F) -> (N, B*F).  Column block b holds batch b.
    x_nbf = jnp.transpose(x, (1, 0, 2)).reshape(node_n, B * in_f)
    # Block-diagonal weight: ONE (B*Fin, B*Fout) matmul replaces B small ones.
    w_bd = jnp.kron(jnp.eye(B, dtype=weight.dtype), weight)
    # Bias tiled once per batch block along lanes.
    bias_row = jnp.tile(bias.reshape(1, out_f), (1, B))

    vmem = pl.BlockSpec(memory_space=pltpu.MemorySpace.VMEM)
    fsz = jnp.dtype(jnp.float32).itemsize
    flops = 2 * node_n * node_n * (B * in_f) + 2 * node_n * (B * in_f) * (B * out_f)

    if layer_nums == 0:
        bytes_acc = fsz * (x_nbf.size + w_bd.size + att.size + bias_row.size
                           + node_n * B * out_f)
        out_nbf = pl.pallas_call(
            _layer0_kernel,
            out_shape=jax.ShapeDtypeStruct((node_n, B * out_f), x.dtype),
            in_specs=[vmem, vmem, vmem, vmem],
            out_specs=vmem,
            cost_estimate=pl.CostEstimate(
                flops=flops, transcendentals=0, bytes_accessed=bytes_acc),
        )(x_nbf, w_bd, att, bias_row)
    else:
        assert in_f == out_f, "identity-mix branch requires in_features == out_features"
        assert y0 is not None
        lamda, alpha = 1.5, 0.2
        beta = math.log(lamda / layer_nums + 1.0)
        y0_nbf = jnp.transpose(y0, (1, 0, 2)).reshape(node_n, B * in_f)
        bytes_acc = fsz * (2 * x_nbf.size + w_bd.size + att.size + bias_row.size
                           + node_n * B * out_f)
        out_nbf = pl.pallas_call(
            _make_deep_kernel(alpha, beta),
            out_shape=jax.ShapeDtypeStruct((node_n, B * out_f), x.dtype),
            in_specs=[vmem, vmem, vmem, vmem, vmem],
            out_specs=vmem,
            cost_estimate=pl.CostEstimate(
                flops=flops, transcendentals=0, bytes_accessed=bytes_acc),
        )(x_nbf, y0_nbf, w_bd, att, bias_row)

    # (N, B*Fout) -> (B, N, Fout)
    return out_nbf.reshape(node_n, B, out_f).transpose(1, 0, 2)


def _reference(x, weight, att, bias, y0=None, layer_nums=0):
    if layer_nums == 0:
        support = jnp.einsum("bnf,fg->bng", x, weight)
        out = jnp.einsum("nm,bmg->bng", att, support)
    else:
        lamda, alpha = 1.5, 0.2
        beta = math.log(lamda / layer_nums + 1.0)
        support = (1.0 - alpha) * jnp.einsum("nm,bmf->bnf", att, x) + alpha * y0
        wmod = beta * weight + (1.0 - beta) * jnp.eye(weight.shape[0], dtype=weight.dtype)
        out = jnp.einsum("bnf,fg->bng", support, wmod)
    return out + bias


if __name__ == "__main__":
    key = jax.random.PRNGKey(0)
    B, node_n, in_f, out_f = 2, 48, 32, 32
    k1, k2, k3, k4, k5 = jax.random.split(key, 5)

    # Deterministic parameter init mirroring reset_parameters().
    stdv = 1.0 / math.sqrt(out_f)
    weight = jax.random.uniform(k1, (in_f, out_f), jnp.float32, -stdv, stdv)
    att = jax.random.uniform(k2, (node_n, node_n), jnp.float32, -stdv, stdv)
    bias = jax.random.uniform(k3, (out_f,), jnp.float32, -stdv, stdv)

    x = jax.random.normal(k4, (B, node_n, in_f), jnp.float32)
    y0 = jax.random.normal(k5, (B, node_n, in_f), jnp.float32)

    out0 = graph_convolution(x, weight, att, bias, layer_nums=0)
    out1 = graph_convolution(x, weight, att, bias, y0=y0, layer_nums=3)
    jax.block_until_ready((out0, out1))

    ref0 = _reference(x, weight, att, bias, layer_nums=0)
    ref1 = _reference(x, weight, att, bias, y0=y0, layer_nums=3)
    # f32 throughout; small tolerance slack only for matmul re-association.
    assert jnp.allclose(out0, ref0, atol=1e-4, rtol=1e-4)
    assert jnp.allclose(out1, ref1, atol=1e-4, rtol=1e-4)

    print("KERNEL_OK")
</pallas_src>

<mosaic_0001>
module attributes {stable_mosaic.version = 11 : i64} {
  func.func @_layer0_kernel(%arg0: memref<48x64xf32, #tpu.memory_space<vmem>>, %arg1: memref<64x64xf32, #tpu.memory_space<vmem>>, %arg2: memref<48x48xf32, #tpu.memory_space<vmem>>, %arg3: memref<1x64xf32, #tpu.memory_space<vmem>>, %arg4: memref<48x64xf32, #tpu.memory_space<vmem>>) attributes {dimension_semantics = [], scalar_prefetch = 0 : i64, scratch_operands = 0 : i64, tpu.core_type = #tpu.core_type<tc>} {
    %c0 = arith.constant 0 : index
    %c0_0 = arith.constant 0 : index
    %0 = vector.load %arg2[%c0, %c0_0] : memref<48x48xf32, #tpu.memory_space<vmem>>, vector<48x48xf32>
    %c0_1 = arith.constant 0 : index
    %c0_2 = arith.constant 0 : index
    %1 = vector.load %arg0[%c0_1, %c0_2] : memref<48x64xf32, #tpu.memory_space<vmem>>, vector<48x64xf32>
    %cst = arith.constant dense<0.000000e+00> : vector<48x64xf32>
    %2 = tpu.matmul %0, %1, %cst {dimension_numbers = #tpu.dot_dimension_numbers<[1], [0], [0], [1], [0, 0, 1, 1], [], []>} : vector<48x48xf32>, vector<48x64xf32>, vector<48x64xf32> -> vector<48x64xf32>
    %c0_3 = arith.constant 0 : index
    %c0_4 = arith.constant 0 : index
    %3 = vector.load %arg1[%c0_3, %c0_4] : memref<64x64xf32, #tpu.memory_space<vmem>>, vector<64x64xf32>
    %cst_5 = arith.constant dense<0.000000e+00> : vector<48x64xf32>
    %4 = tpu.matmul %2, %3, %cst_5 {dimension_numbers = #tpu.dot_dimension_numbers<[1], [0], [0], [1], [0, 0, 1, 1], [], []>} : vector<48x64xf32>, vector<64x64xf32>, vector<48x64xf32> -> vector<48x64xf32>
    %c0_6 = arith.constant 0 : index
    %c0_7 = arith.constant 0 : index
    %5 = vector.load %arg3[%c0_6, %c0_7] : memref<1x64xf32, #tpu.memory_space<vmem>>, vector<1x64xf32>
    %6 = vector.broadcast %5 : vector<1x64xf32> to vector<48x64xf32>
    %7 = arith.addf %4, %6 : vector<48x64xf32>
    %c0_8 = arith.constant 0 : index
    %c0_9 = arith.constant 0 : index
    %8 = vector.load %arg4[%c0_8, %c0_9] : memref<48x64xf32, #tpu.memory_space<vmem>>, vector<48x64xf32>
    tpu.vector_store %arg4[%c0_8, %c0_9], %7 {strides = array<i32>} : memref<48x64xf32, #tpu.memory_space<vmem>>, vector<48x64xf32>,
    return
  }
}

</mosaic_0001>

<bundles_post_ra>
// kernel: tpu_custom_call.1
= control target key start
LH: loop header
LB: loop body
LE: loop exit
PB: predicated region body
PF: predicated region fallthrough
CT: control target
= control target key end

     0   :  { %9 = vsyncpa [#allocation3], 0  ;;  %s434_s0 = inlined_call_operand.hbm [shape: f32[48,64], index: 0, kind: input, shape index: {}]   ;;  %s435_s1 = inlined_call_operand.hbm [shape: f32[64,64], index: 1, kind: input, shape index: {}]   ;;  %s436_s2 = inlined_call_operand.hbm [shape: f32[48,48], index: 2, kind: input, shape index: {}]   ;;  %s437_s3 = inlined_call_operand.vmem [shape: f32[1,64], index: 3, kind: input, shape index: {}]   ;;  %s438_s4 = inlined_call_operand.hbm [shape: f32[48,64], index: 4, kind: output, shape index: {}]  }
   0x1   :  { %10 = vsyncpa [#allocation6], 0 }
   0x2   :  { %11 = vsyncpa [#allocation4], 0  ;;  %s29_s17 = sshll.u32 %s435_s1, 4  ;;  %s358_s18 = smov [#allocation5]   ;;  %s30_s17 = int_to_ptr.hbm [resolvable:$true] %s29_s17 }
   0x3   :  { %s31_s19 = sshll.u32 %s358_s18, 4  ;;  %s16_s22 = sshll.u32 %s434_s0, 4  ;;  %s32_s19 = int_to_ptr.vmem [resolvable:$true] %s31_s19  ;;  %s17_s22 = int_to_ptr.hbm [resolvable:$true] %s16_s22 }
   0x4   :  { %s359_s23 = smov 128   ;;  %s360_s24 = smov 8  }
   0x5   :  { %37 = dma.hbm_to_vmem [thread:$0]  %s30_s17, 1024, %s32_s19, [#allocation6], %s359_s23, %s359_s23, %s360_s24  }
   0x6   :  { %s361_s25 = smov [#allocation2]   ;;  %s42_s1 = sshll.u32 %s436_s2, 4  ;;  %s43_s1 = int_to_ptr.hbm [resolvable:$true] %s42_s1 }
   0x7   :  { %s18_s26 = sshll.u32 %s361_s25, 4  ;;  %s362_s0 = smov [#allocation7]   ;;  %s19_s26 = int_to_ptr.vmem [resolvable:$true] %s18_s26 }
   0x8   :  { %24 = dma.hbm_to_vmem [thread:$0]  %s17_s22, 768, %s19_s26, [#allocation3], %s359_s23, %s359_s23, %s360_s24  }
   0x9   :  { %s44_s29 = sshll.u32 %s362_s0, 4  ;;  %s45_s29 = int_to_ptr.vmem [resolvable:$true] %s44_s29 }
   0xa   :  { %50 = dma.hbm_to_vmem [thread:$0]  %s43_s1, 768, %s45_s29, [#allocation6], %s359_s23, %s359_s23, %s360_s24  }
   0xb   :  { %352 = dma.done.wait [#allocation3], 768  }
   0xc   :  { %353 = vsyncadd [#allocation3], 4294966528 }
   0xd   :  { %354 = dma.done.wait [#allocation6], 1792  }
   0xe   :  { %355 = vsyncadd [#allocation6], 4294965504  ;;  %v76_v0 = vld [vmem:[#allocation2 + $0x28] sm:$0xff]  ;;  %v75_v1 = vld [vmem:[#allocation2 + $0x20] sm:$0xff]  ;;  %vm77_vm0 = vcmask 392192   ;;  %vm143_vm1 = vcmask 523264  }
   0xf   :  { %106 = vmatpush.msra.mxu0 %v76_v0  ;;  %235 = vmatpush.msra.mxu3 %v76_v0  ;;  %v74_v2 = vld [vmem:[#allocation2 + $0x18] sm:$0xff]  ;;  %v73_v3 = vld [vmem:[#allocation2 + $0x10] sm:$0xff]  ;;  %v138_v4 = vld [vmem:[#allocation5 + $0x38] sm:$0xff]  ;;  %s209_s8 = sshll.u32 %s438_s4, 4  ;;  %s210_s8 = int_to_ptr.hbm [resolvable:$true] %s209_s8 }
  0x10   :  { %v137_v5 = vld [vmem:[#allocation5 + $0x30] sm:$0xff]  ;;  %v72_v6 = vld [vmem:[#allocation2 + $0x8] sm:$0xff]  ;;  %170 = vmatpush.msra.mxu1 %v138_v4  ;;  %241 = vmatpush.msra.mxu2 %v138_v4  ;;  %v136_v7 = vld [vmem:[#allocation5 + $0x28] sm:$0xff] }
  0x11   :  { %107 = vmatpush.msra.mxu0 %v75_v1  ;;  %236 = vmatpush.msra.mxu3 %v75_v1  ;;  %v71_v8 = vld [vmem:[#allocation2] sm:$0xff]  ;;  %v65_v9 = vld [vmem:[#allocation7] sm:$0xff]  ;;  %v134_v12 = vld [vmem:[#allocation5 + $0x18] sm:$0xff] }
  0x12   :  { %171 = vmatpush.msra.mxu1 %v137_v5  ;;  %242 = vmatpush.msra.mxu2 %v137_v5  ;;  %v69_v10 = vld [vmem:[#allocation7 + $0x20] sm:$0xff]  ;;  %v133_v13 = vld [vmem:[#allocation5 + $0x10] sm:$0xff]  ;;  %v132_v14 = vld [vmem:[#allocation5 + $0x8] sm:$0xff] }
  0x13   :  { %108 = vmatpush.msra.mxu0 %v74_v2  ;;  %237 = vmatpush.msra.mxu3 %v74_v2  ;;  %v135_v11 = vld [vmem:[#allocation5 + $0x20] sm:$0xff]  ;;  %v66_v15 = vld [vmem:[#allocation7 + $0x8] sm:$0xff]  ;;  %v67_v17 = vld [vmem:[#allocation7 + $0x10] sm:$0xff] }
  0x14   :  { %172 = vmatpush.msra.mxu1 %v136_v7  ;;  %243 = vmatpush.msra.mxu2 %v136_v7  ;;  %v70_v16 = vld [vmem:[#allocation7 + $0x28] sm:$0xff]  ;;  %v68_v18 = vld [vmem:[#allocation7 + $0x18] sm:$0xff]  ;;  %v131_v19 = vld [vmem:[#allocation5] sm:$0xff] }
  0x15   :  { %109 = vmatpush.msra.mxu0 %v73_v3  ;;  %238 = vmatpush.msra.mxu3 %v73_v3  ;;  %v255_v26 = vld [vmem:[%s437_s3] ss:$0 sm:$0xff]  ;;  %s363_s3 = smov [#allocation8]  }
  0x16   :  { %173 = vmatpush.msra.mxu1 %v135_v11  ;;  %244 = vmatpush.msra.mxu2 %v135_v11  ;;  %s207_s5 = sshll.u32 %s363_s3, 4  ;;  %s208_s5 = int_to_ptr.vmem [resolvable:$true] %s207_s5 }
  0x17   :  { %110 = vmatpush.msra.mxu0 %v72_v6  ;;  %239 = vmatpush.msra.mxu3 %v72_v6 }
  0x18   :  { %174 = vmatpush.msra.mxu1 %v134_v12  ;;  %245 = vmatpush.msra.mxu2 %v134_v12 }
  0x19   :  { %111 = vmatpush.msra.mxu0 %v71_v8  ;;  %240 = vmatpush.msra.mxu3 %v71_v8 }
  0x1a   :  { %223 = vmatmul.msk.f32.vlgmr.msra.gmra.mxu0 %vm77_vm0, %v65_v9  ;;  %227 = vmatmul.msk.f32.vlgmr.msra.gmra.mxu3 %vm77_vm0, %v69_v10 }
  0x1b   :  { %175 = vmatpush.msra.mxu1 %v133_v13  ;;  %246 = vmatpush.msra.mxu2 %v133_v13 }
  0x1d   :  { %176 = vmatpush.msra.mxu1 %v132_v14  ;;  %247 = vmatpush.msra.mxu2 %v132_v14 }
  0x1f   :  { %177 = vmatpush.msra.mxu1 %v131_v19  ;;  %248 = vmatpush.msra.mxu2 %v131_v19 }
  0x22   :  { %224 = vmatmul.msk.f32.gmra.mxu0 %vm77_vm0, %v66_v15  ;;  %228 = vmatmul.msk.f32.gmra.mxu3 %vm77_vm0, %v70_v16 }
  0x2a   :  { %225 = vmatmul.msk.f32.gmra.mxu0 %vm77_vm0, %v67_v17 }
  0x32   :  { %226 = vmatmul.msk.f32.gmra.mxu0 %vm77_vm0, %v68_v18 }
  0x97   :  { %v113_v20 = vpop.f32.mrf.mxu0 }
  0x98   :  { %229 = vmatmul.msk.f32.vlgmr.msra.gmra.mxu1 %vm143_vm1, %v113_v20 }
  0x9d   :  { %v125_v24 = vpop.f32.mrf.mxu3 }
  0x9f   :  { %v116_v21 = vpop.f32.mrf.mxu0 }
  0xa0   :  { %230 = vmatmul.msk.f32.gmra.mxu1 %vm143_vm1, %v116_v21 }
  0xa5   :  { %v128_v25 = vpop.f32.mrf.mxu3 }
  0xa7   :  { %v119_v22 = vpop.f32.mrf.mxu0 }
  0xa8   :  { %231 = vmatmul.msk.f32.gmra.mxu1 %vm143_vm1, %v119_v22 }
  0xaf   :  { %v122_v23 = vpop.f32.mrf.mxu0 }
  0xb0   :  { %232 = vmatmul.msk.f32.vlgmr.msra.gmra.mxu2 %vm143_vm1, %v122_v23 }
  0xb8   :  { %233 = vmatmul.msk.f32.gmra.mxu2 %vm143_vm1, %v125_v24 }
  0xc0   :  { %234 = vmatmul.msk.f32.gmra.mxu2 %vm143_vm1, %v128_v25 }
 0x115   :  { %v179_v27 = vpop.f32.mrf.mxu1 }
 0x116   :  { %v180_v28 = vadd.f32 %v255_v26, %v179_v27 }
 0x118   :  { %197 = vst.msk [vmem:[#allocation8] sm:$0xff] %vm143_vm1, %v180_v28 }
 0x11d   :  { %v182_v29 = vpop.f32.mrf.mxu1 }
 0x11e   :  { %v183_v30 = vadd.f32 %v255_v26, %v182_v29 }
 0x120   :  { %198 = vst.msk [vmem:[#allocation8 + $0x8] sm:$0xff] %vm143_vm1, %v183_v30 }
 0x125   :  { %v185_v31 = vpop.f32.mrf.mxu1 }
 0x126   :  { %v186_v32 = vadd.f32 %v255_v26, %v185_v31 }
 0x128   :  { %199 = vst.msk [vmem:[#allocation8 + $0x10] sm:$0xff] %vm143_vm1, %v186_v32 }
 0x133   :  { %v188_v33 = vpop.f32.mrf.mxu2 }
 0x134   :  { %v189_v34 = vadd.f32 %v255_v26, %v188_v33 }
 0x136   :  { %200 = vst.msk [vmem:[#allocation8 + $0x18] sm:$0xff] %vm143_vm1, %v189_v34 }
 0x13b   :  { %v191_v35 = vpop.f32.mrf.mxu2 }
 0x13c   :  { %v192_v36 = vadd.f32 %v255_v26, %v191_v35 }
 0x13e   :  { %201 = vst.msk [vmem:[#allocation8 + $0x20] sm:$0xff] %vm143_vm1, %v192_v36 }
 0x143   :  { %v194_v37 = vpop.f32.mrf.mxu2 }
 0x144   :  { %v195_v38 = vadd.f32 %v255_v26, %v194_v37 }
 0x146   :  { %202 = vst.msk [vmem:[#allocation8 + $0x28] sm:$0xff] %vm143_vm1, %v195_v38 }
 0x147   :  { %215 = dma.vmem_to_hbm [thread:$0]  %s208_s5, 768, %s210_s8, [#allocation4], %s359_s23, %s359_s23, %s360_s24  }
 0x148   :  { %356 = dma.done.wait [#allocation4], 768  }
 0x149   :  { %357 = vsyncadd [#allocation4], 4294966528 }
 0x14a   :  { %220 = vsyncpa [#allocation3], 1 }
 0x14b   :  { %221 = vsyncpa [#allocation6], 1 }
 0x14c   :  { %222 = vsyncpa [#allocation4], 1 }

</bundles_post_ra>
